<compile_context>
chip_gen: v7x
topology: tpu7x:2x2x1
jax: 0.10.0
libtpu: 0.0.40
codegen_flags: <defaults>
</compile_context>

<pallas_src>
import functools

import numpy as np
import jax
import jax.numpy as jnp
from jax.experimental import pallas as pl
from jax.experimental.pallas import tpu as pltpu

LANE = 128      # f32 lane width  (vreg tile = (8, 128))
SUBLANE = 8     # f32 sublane width


def _round_up(n, m):
    return (n + m - 1) // m * m


# ----------------------------- Pallas kernel ------------------------------- #

def lstm_fused_kernel(x_ref, wih_ref, whh_ref, b_ref, wfc_ref, bfc_ref,
                      out_ref, gx_sc, h_sc, c_sc, *, bp, tc):
    """Layer-0 LSTM recurrence over one time chunk + fused FC head on last chunk.

    x_ref:   (tc*bp, D)   time-major chunk, row = t_local * bp + batch
    wih_ref: (D, 4*Hp)    W_ih^T, per-gate padded (gate order i,f,g,o)
    whh_ref: (Hp, 4*Hp)   W_hh^T, per-gate padded
    b_ref:   (1, 4*Hp)    b_ih + b_hh, per-gate padded
    wfc_ref: (Hp, LANE)   FC weight (real column 0, rest zero -> lane-dense out)
    bfc_ref: (1, LANE)    FC bias (column 0)
    out_ref: (bp, LANE)   fc(h_T); written only on the last grid step
    gx_sc:   VMEM (tc*bp, 4*Hp)  hoisted input projection (+bias) for the chunk
    h_sc/c_sc: VMEM (bp, Hp)     recurrent state, persistent across grid steps
    """
    hp = whh_ref.shape[0]
    step_idx = pl.program_id(0)

    @pl.when(step_idx == 0)
    def _init():
        h_sc[...] = jnp.zeros_like(h_sc)
        c_sc[...] = jnp.zeros_like(c_sc)

    # Hoisted input projection for the whole chunk: one big MXU matmul with the
    # (time-invariant) bias folded in, so the serial loop only does the small
    # recurrent matmul + elementwise gate math.
    gx_sc[...] = (jnp.dot(x_ref[...], wih_ref[...],
                          preferred_element_type=jnp.float32) + b_ref[...])

    whh = whh_ref[...]          # (Hp, 4Hp), loaded once outside the loop

    def step(t, carry):
        row = pl.multiple_of(t * bp, bp)        # bp is a multiple of 8 -> aligned
        gx_t = gx_sc[pl.ds(row, bp), :]         # (bp, 4Hp)
        h = h_sc[...]
        c = c_sc[...]
        gates = gx_t + jnp.dot(h, whh, preferred_element_type=jnp.float32)
        # Hp is a multiple of 128 -> lane-dense, 128-aligned gate blocks.
        i = jax.nn.sigmoid(gates[:, 0 * hp:1 * hp])
        f = jax.nn.sigmoid(gates[:, 1 * hp:2 * hp])
        g = jnp.tanh(gates[:, 2 * hp:3 * hp])
        o = jax.nn.sigmoid(gates[:, 3 * hp:4 * hp])
        c_new = f * c + i * g
        h_sc[...] = o * jnp.tanh(c_new)
        c_sc[...] = c_new
        return carry

    # Short static trip count -> unroll so the LLO scheduler can overlap the
    # h @ W_hh matmul with the previous step's EUP (sigmoid/tanh) work.
    jax.lax.fori_loop(0, tc, step, 0, unroll=True)

    # Fused FC head: only after the final time chunk (h_sc then holds h_T of layer 0).
    @pl.when(step_idx == pl.num_programs(0) - 1)
    def _finalize():
        out_ref[...] = (jnp.dot(h_sc[...], wfc_ref[...],
                                preferred_element_type=jnp.float32) + bfc_ref[...])


# -------------------- parameter preparation (runs once) -------------------- #

def _pad_gate_matrix(w, hidden, hp, in_dim, in_dim_p):
    """(4H, in_dim) PyTorch-layout weight -> (in_dim_p, 4*Hp), transposed + padded."""
    w4 = w.reshape(4, hidden, in_dim)
    out = jnp.zeros((4, hp, in_dim_p), w.dtype).at[:, :hidden, :in_dim].set(w4)
    return out.reshape(4 * hp, in_dim_p).T


def _pad_gate_bias(b, hidden, hp):
    """(1, 4H) combined bias -> (1, 4*Hp)."""
    b4 = b.reshape(4, hidden)
    out = jnp.zeros((4, hp), b.dtype).at[:, :hidden].set(b4)
    return out.reshape(1, 4 * hp)


def prepare_pallas_params(params, *, hidden):
    """Pre-transpose / pad weights once, outside the jitted forward."""
    hp = _round_up(hidden, LANE)
    w_ih, w_hh, bias = params["layers"][0]   # only layer 0 feeds the output (hn[0])
    d_in = w_ih.shape[1]
    wfc = params["w_fc"]                     # (1, H)
    bfc = params["b_fc"]                     # (1,)
    # TODO(synk): on v6e/v7x cast wih_t/whh_t (and streamed x) to bfloat16 with f32
    # accumulation for ~2x MXU throughput; kept f32 here for tight numeric checks.
    return {
        "wih_t": _pad_gate_matrix(w_ih, hidden, hp, d_in, d_in),   # (D, 4Hp)
        "whh_t": _pad_gate_matrix(w_hh, hidden, hp, hidden, hp),   # (Hp, 4Hp)
        "bias":  _pad_gate_bias(bias, hidden, hp),                 # (1, 4Hp)
        "wfc":   jnp.zeros((hp, LANE), jnp.float32).at[:hidden, 0].set(wfc[0]),
        "bfc":   jnp.zeros((1, LANE), jnp.float32).at[0, 0].set(bfc[0]),
    }


# ------------------------------- forward pass ------------------------------ #

@functools.partial(jax.jit, static_argnames=("time_chunk",))
def lstm_model_forward(x, pp, *, time_chunk=None):
    """x: (B, T, num_features) -> (B,), equal to fc(hn[0]).flatten() of the module."""
    B, T, D = x.shape
    bp = _round_up(B, SUBLANE)
    hp = pp["whh_t"].shape[0]
    outp = pp["wfc"].shape[1]

    tc = time_chunk if (time_chunk is not None and T % time_chunk == 0) else T
    n_chunks = T // tc

    # Pad batch to the f32 sublane tile and lay x out time-major, flattened to 2-D
    # so each timestep is an aligned (bp, :) sublane window of its chunk.
    # TODO(synk): for long sequences fold this transpose/pad into the BlockSpec /
    # hoisted projection instead of materializing x_tm in HBM.
    x_p = jnp.pad(x, ((0, bp - B), (0, 0), (0, 0)))
    x_tm = jnp.transpose(x_p, (1, 0, 2)).reshape(T * bp, D)

    kernel = functools.partial(lstm_fused_kernel, bp=bp, tc=tc)
    out = pl.pallas_call(
        kernel,
        out_shape=jax.ShapeDtypeStruct((bp, outp), jnp.float32),
        grid_spec=pltpu.PrefetchScalarGridSpec(
            num_scalar_prefetch=0,
            grid=(n_chunks,),
            in_specs=[
                pl.BlockSpec((tc * bp, D), lambda t: (t, 0)),   # streamed x chunk
                pl.BlockSpec((D, 4 * hp), lambda t: (0, 0)),    # resident weights
                pl.BlockSpec((hp, 4 * hp), lambda t: (0, 0)),
                pl.BlockSpec((1, 4 * hp), lambda t: (0, 0)),
                pl.BlockSpec((hp, outp), lambda t: (0, 0)),
                pl.BlockSpec((1, outp), lambda t: (0, 0)),
            ],
            out_specs=pl.BlockSpec((bp, outp), lambda t: (0, 0)),
            scratch_shapes=[
                pltpu.VMEM((tc * bp, 4 * hp), jnp.float32),   # hoisted projection
                pltpu.VMEM((bp, hp), jnp.float32),            # h state
                pltpu.VMEM((bp, hp), jnp.float32),            # c state
            ],
        ),
        compiler_params=pltpu.CompilerParams(
            dimension_semantics=("arbitrary",)),    # serial recurrence over time
    )(x_tm, pp["wih_t"], pp["whh_t"], pp["bias"], pp["wfc"], pp["bfc"])

    return out[:B, 0]


# -------------------------- parameter construction ------------------------- #

def init_params(key, num_features, hidden, num_layers):
    """Raw PyTorch-layout parameters (all layers, for the faithful reference)."""
    k = 1.0 / np.sqrt(hidden)
    layers = []
    for layer in range(num_layers):
        d_in = num_features if layer == 0 else hidden
        key, k1, k2, k3, k4 = jax.random.split(key, 5)
        w_ih = jax.random.uniform(k1, (4 * hidden, d_in), jnp.float32, -k, k)
        w_hh = jax.random.uniform(k2, (4 * hidden, hidden), jnp.float32, -k, k)
        b_ih = jax.random.uniform(k3, (4 * hidden,), jnp.float32, -k, k)
        b_hh = jax.random.uniform(k4, (4 * hidden,), jnp.float32, -k, k)
        bias = (b_ih + b_hh).reshape(1, 4 * hidden)
        layers.append((w_ih, w_hh, bias))
    key, k5, k6 = jax.random.split(key, 3)
    w_fc = jax.random.uniform(k5, (1, hidden), jnp.float32, -k, k)
    b_fc = jax.random.uniform(k6, (1,), jnp.float32, -k, k)
    return {"layers": layers, "w_fc": w_fc, "b_fc": b_fc}


# ------------------------------ JAX reference ------------------------------ #

def reference_forward(x, params):
    """Pure-JAX replica of the PyTorch module (runs ALL layers, reads hn[0])."""
    B, T, _ = x.shape
    H = params["layers"][0][1].shape[1]
    inp = x
    h_finals = []
    for (w_ih, w_hh, bias) in params["layers"]:
        h = jnp.zeros((B, H), jnp.float32)
        c = jnp.zeros((B, H), jnp.float32)
        ys = []
        for t in range(T):
            gates = inp[:, t, :] @ w_ih.T + h @ w_hh.T + bias
            i = jax.nn.sigmoid(gates[:, 0 * H:1 * H])
            f = jax.nn.sigmoid(gates[:, 1 * H:2 * H])
            g = jnp.tanh(gates[:, 2 * H:3 * H])
            o = jax.nn.sigmoid(gates[:, 3 * H:4 * H])
            c = f * c + i * g
            h = o * jnp.tanh(c)
            ys.append(h)
        inp = jnp.stack(ys, axis=1)
        h_finals.append(h)
    return (h_finals[0] @ params["w_fc"].T + params["b_fc"]).reshape(-1)


# ---------------------------------- main ----------------------------------- #

if __name__ == "__main__":
    B, T, F, H, L = 3, 8, 8, 32, 2     # batch, seq, num_features, hidden, layers

    key = jax.random.PRNGKey(0)
    key, kx, kp = jax.random.split(key, 3)
    x = jax.random.normal(kx, (B, T, F), jnp.float32)
    params = init_params(kp, F, H, L)
    pallas_params = prepare_pallas_params(params, hidden=H)

    # time_chunk=4 -> grid of 2 time chunks, exercising the persistent h/c carry.
    out = lstm_model_forward(x, pallas_params, time_chunk=4)
    out = jax.block_until_ready(out)

    ref = reference_forward(x, params)
    np.testing.assert_allclose(np.asarray(out), np.asarray(ref), rtol=2e-3, atol=2e-3)
    assert out.shape == (B,)

    print("KERNEL_OK")
</pallas_src>

<mosaic_0001>
module attributes {stable_mosaic.version = 11 : i64} {
  func.func @lstm_fused_kernel(%arg0: i32, %arg1: memref<32x8xf32, #tpu.memory_space<vmem>>, %arg2: memref<8x512xf32, #tpu.memory_space<vmem>>, %arg3: memref<128x512xf32, #tpu.memory_space<vmem>>, %arg4: memref<1x512xf32, #tpu.memory_space<vmem>>, %arg5: memref<128x128xf32, #tpu.memory_space<vmem>>, %arg6: memref<1x128xf32, #tpu.memory_space<vmem>>, %arg7: memref<8x128xf32, #tpu.memory_space<vmem>>, %arg8: memref<32x512xf32, #tpu.memory_space<vmem>>, %arg9: memref<8x128xf32, #tpu.memory_space<vmem>>, %arg10: memref<8x128xf32, #tpu.memory_space<vmem>>) attributes {dimension_semantics = [#tpu.dimension_semantics<arbitrary>], iteration_bounds = array<i64: 2>, scalar_prefetch = 0 : i64, scratch_operands = 3 : i64, tpu.core_type = #tpu.core_type<tc>, window_params = [{transform_indices = @transform_0, window_bounds = array<i64: 32, 8>}, {pipeline_mode = #tpu.pipeline_mode<synchronous>, transform_indices = @transform_1, window_bounds = array<i64: 8, 512>}, {pipeline_mode = #tpu.pipeline_mode<synchronous>, transform_indices = @transform_2, window_bounds = array<i64: 128, 512>}, {pipeline_mode = #tpu.pipeline_mode<synchronous>, transform_indices = @transform_3, window_bounds = array<i64: 1, 512>}, {pipeline_mode = #tpu.pipeline_mode<synchronous>, transform_indices = @transform_4, window_bounds = array<i64: 128, 128>}, {pipeline_mode = #tpu.pipeline_mode<synchronous>, transform_indices = @transform_5, window_bounds = array<i64: 1, 128>}, {pipeline_mode = #tpu.pipeline_mode<synchronous>, transform_indices = @transform_6, window_bounds = array<i64: 8, 128>}]} {
    %c0_i32 = arith.constant 0 : i32
    %0 = arith.cmpi eq, %arg0, %c0_i32 : i32
    %1 = arith.extui %0 : i1 to i32
    %c0_i32_0 = arith.constant 0 : i32
    %2 = arith.cmpi ne, %1, %c0_i32_0 : i32
    scf.if %2 {
      %cst_68 = arith.constant 0.000000e+00 : f32
      %154 = vector.broadcast %cst_68 : f32 to vector<8x128xf32>
      %c0_69 = arith.constant 0 : index
      %c0_70 = arith.constant 0 : index
      %155 = vector.load %arg9[%c0_69, %c0_70] : memref<8x128xf32, #tpu.memory_space<vmem>>, vector<8x128xf32>
      tpu.vector_store %arg9[%c0_69, %c0_70], %154 {strides = array<i32>} : memref<8x128xf32, #tpu.memory_space<vmem>>, vector<8x128xf32>,
      %cst_71 = arith.constant 0.000000e+00 : f32
      %156 = vector.broadcast %cst_71 : f32 to vector<8x128xf32>
      %c0_72 = arith.constant 0 : index
      %c0_73 = arith.constant 0 : index
      %157 = vector.load %arg10[%c0_72, %c0_73] : memref<8x128xf32, #tpu.memory_space<vmem>>, vector<8x128xf32>
      tpu.vector_store %arg10[%c0_72, %c0_73], %156 {strides = array<i32>} : memref<8x128xf32, #tpu.memory_space<vmem>>, vector<8x128xf32>,
    } else {
    }
    %c0 = arith.constant 0 : index
    %c0_1 = arith.constant 0 : index
    %3 = vector.load %arg1[%c0, %c0_1] : memref<32x8xf32, #tpu.memory_space<vmem>>, vector<32x8xf32>
    %c0_2 = arith.constant 0 : index
    %c0_3 = arith.constant 0 : index
    %4 = vector.load %arg2[%c0_2, %c0_3] : memref<8x512xf32, #tpu.memory_space<vmem>>, vector<8x512xf32>
    %cst = arith.constant dense<0.000000e+00> : vector<32x512xf32>
    %5 = tpu.matmul %3, %4, %cst {dimension_numbers = #tpu.dot_dimension_numbers<[1], [0], [0], [1], [0, 0, 1, 1], [], []>} : vector<32x8xf32>, vector<8x512xf32>, vector<32x512xf32> -> vector<32x512xf32>
    %c0_4 = arith.constant 0 : index
    %c0_5 = arith.constant 0 : index
    %6 = vector.load %arg4[%c0_4, %c0_5] : memref<1x512xf32, #tpu.memory_space<vmem>>, vector<1x512xf32>
    %7 = vector.broadcast %6 : vector<1x512xf32> to vector<32x512xf32>
    %8 = arith.addf %5, %7 : vector<32x512xf32>
    %c0_6 = arith.constant 0 : index
    %c0_7 = arith.constant 0 : index
    %9 = vector.load %arg8[%c0_6, %c0_7] : memref<32x512xf32, #tpu.memory_space<vmem>>, vector<32x512xf32>
    tpu.vector_store %arg8[%c0_6, %c0_7], %8 {strides = array<i32>} : memref<32x512xf32, #tpu.memory_space<vmem>>, vector<32x512xf32>,
    %c0_8 = arith.constant 0 : index
    %c0_9 = arith.constant 0 : index
    %10 = vector.load %arg3[%c0_8, %c0_9] : memref<128x512xf32, #tpu.memory_space<vmem>>, vector<128x512xf32>
    %c0_i32_10 = arith.constant 0 : i32
    %c8_i32 = arith.constant 8 : i32
    %11 = arith.muli %c0_i32_10, %c8_i32 : i32
    %12 = tpu.assume_multiple %11, 8 : i32
    %13 = arith.index_cast %12 : i32 to index
    %c0_11 = arith.constant 0 : index
    %14 = vector.load %arg8[%13, %c0_11] : memref<32x512xf32, #tpu.memory_space<vmem>>, vector<8x512xf32>
    %c0_12 = arith.constant 0 : index
    %c0_13 = arith.constant 0 : index
    %15 = vector.load %arg9[%c0_12, %c0_13] : memref<8x128xf32, #tpu.memory_space<vmem>>, vector<8x128xf32>
    %c0_14 = arith.constant 0 : index
    %c0_15 = arith.constant 0 : index
    %16 = vector.load %arg10[%c0_14, %c0_15] : memref<8x128xf32, #tpu.memory_space<vmem>>, vector<8x128xf32>
    %cst_16 = arith.constant dense<0.000000e+00> : vector<8x512xf32>
    %17 = tpu.matmul %15, %10, %cst_16 {dimension_numbers = #tpu.dot_dimension_numbers<[1], [0], [0], [1], [0, 0, 1, 1], [], []>} : vector<8x128xf32>, vector<128x512xf32>, vector<8x512xf32> -> vector<8x512xf32>
    %18 = arith.addf %14, %17 : vector<8x512xf32>
    %19 = vector.extract_strided_slice %18 {offsets = [0, 0], sizes = [8, 128], strides = [1, 1]} : vector<8x512xf32> to vector<8x128xf32>
    %20 = arith.negf %19 : vector<8x128xf32>
    %21 = math.exp %20 : vector<8x128xf32>
    %cst_17 = arith.constant 1.000000e+00 : f32
    %22 = vector.broadcast %cst_17 : f32 to vector<8x128xf32>
    %23 = arith.addf %22, %21 : vector<8x128xf32>
    %24 = arith.divf %22, %23 : vector<8x128xf32>
    %25 = vector.extract_strided_slice %18 {offsets = [0, 128], sizes = [8, 128], strides = [1, 1]} : vector<8x512xf32> to vector<8x128xf32>
    %26 = arith.negf %25 : vector<8x128xf32>
    %27 = math.exp %26 : vector<8x128xf32>
    %cst_18 = arith.constant 1.000000e+00 : f32
    %28 = vector.broadcast %cst_18 : f32 to vector<8x128xf32>
    %29 = arith.addf %28, %27 : vector<8x128xf32>
    %30 = arith.divf %28, %29 : vector<8x128xf32>
    %31 = vector.extract_strided_slice %18 {offsets = [0, 256], sizes = [8, 128], strides = [1, 1]} : vector<8x512xf32> to vector<8x128xf32>
    %32 = math.tanh %31 : vector<8x128xf32>
    %33 = vector.extract_strided_slice %18 {offsets = [0, 384], sizes = [8, 128], strides = [1, 1]} : vector<8x512xf32> to vector<8x128xf32>
    %34 = arith.negf %33 : vector<8x128xf32>
    %35 = math.exp %34 : vector<8x128xf32>
    %cst_19 = arith.constant 1.000000e+00 : f32
    %36 = vector.broadcast %cst_19 : f32 to vector<8x128xf32>
    %37 = arith.addf %36, %35 : vector<8x128xf32>
    %38 = arith.divf %36, %37 : vector<8x128xf32>
    %39 = arith.mulf %30, %16 : vector<8x128xf32>
    %40 = arith.mulf %24, %32 : vector<8x128xf32>
    %41 = arith.addf %39, %40 : vector<8x128xf32>
    %42 = math.tanh %41 : vector<8x128xf32>
    %43 = arith.mulf %38, %42 : vector<8x128xf32>
    %c0_20 = arith.constant 0 : index
    %c0_21 = arith.constant 0 : index
    %44 = vector.load %arg9[%c0_20, %c0_21] : memref<8x128xf32, #tpu.memory_space<vmem>>, vector<8x128xf32>
    tpu.vector_store %arg9[%c0_20, %c0_21], %43 {strides = array<i32>} : memref<8x128xf32, #tpu.memory_space<vmem>>, vector<8x128xf32>,
    %c0_22 = arith.constant 0 : index
    %c0_23 = arith.constant 0 : index
    %45 = vector.load %arg10[%c0_22, %c0_23] : memref<8x128xf32, #tpu.memory_space<vmem>>, vector<8x128xf32>
    tpu.vector_store %arg10[%c0_22, %c0_23], %41 {strides = array<i32>} : memref<8x128xf32, #tpu.memory_space<vmem>>, vector<8x128xf32>,
    %c1_i32 = arith.constant 1 : i32
    %c8_i32_24 = arith.constant 8 : i32
    %46 = arith.muli %c1_i32, %c8_i32_24 : i32
    %47 = tpu.assume_multiple %46, 8 : i32
    %48 = arith.index_cast %47 : i32 to index
    %c0_25 = arith.constant 0 : index
    %49 = vector.load %arg8[%48, %c0_25] : memref<32x512xf32, #tpu.memory_space<vmem>>, vector<8x512xf32>
    %c0_26 = arith.constant 0 : index
    %c0_27 = arith.constant 0 : index
    %50 = vector.load %arg9[%c0_26, %c0_27] : memref<8x128xf32, #tpu.memory_space<vmem>>, vector<8x128xf32>
    %c0_28 = arith.constant 0 : index
    %c0_29 = arith.constant 0 : index
    %51 = vector.load %arg10[%c0_28, %c0_29] : memref<8x128xf32, #tpu.memory_space<vmem>>, vector<8x128xf32>
    %cst_30 = arith.constant dense<0.000000e+00> : vector<8x512xf32>
    %52 = tpu.matmul %50, %10, %cst_30 {dimension_numbers = #tpu.dot_dimension_numbers<[1], [0], [0], [1], [0, 0, 1, 1], [], []>} : vector<8x128xf32>, vector<128x512xf32>, vector<8x512xf32> -> vector<8x512xf32>
    %53 = arith.addf %49, %52 : vector<8x512xf32>
    %54 = vector.extract_strided_slice %53 {offsets = [0, 0], sizes = [8, 128], strides = [1, 1]} : vector<8x512xf32> to vector<8x128xf32>
    %55 = arith.negf %54 : vector<8x128xf32>
    %56 = math.exp %55 : vector<8x128xf32>
    %cst_31 = arith.constant 1.000000e+00 : f32
    %57 = vector.broadcast %cst_31 : f32 to vector<8x128xf32>
    %58 = arith.addf %57, %56 : vector<8x128xf32>
    %59 = arith.divf %57, %58 : vector<8x128xf32>
    %60 = vector.extract_strided_slice %53 {offsets = [0, 128], sizes = [8, 128], strides = [1, 1]} : vector<8x512xf32> to vector<8x128xf32>
    %61 = arith.negf %60 : vector<8x128xf32>
    %62 = math.exp %61 : vector<8x128xf32>
    %cst_32 = arith.constant 1.000000e+00 : f32
    %63 = vector.broadcast %cst_32 : f32 to vector<8x128xf32>
    %64 = arith.addf %63, %62 : vector<8x128xf32>
    %65 = arith.divf %63, %64 : vector<8x128xf32>
    %66 = vector.extract_strided_slice %53 {offsets = [0, 256], sizes = [8, 128], strides = [1, 1]} : vector<8x512xf32> to vector<8x128xf32>
    %67 = math.tanh %66 : vector<8x128xf32>
    %68 = vector.extract_strided_slice %53 {offsets = [0, 384], sizes = [8, 128], strides = [1, 1]} : vector<8x512xf32> to vector<8x128xf32>
    %69 = arith.negf %68 : vector<8x128xf32>
    %70 = math.exp %69 : vector<8x128xf32>
    %cst_33 = arith.constant 1.000000e+00 : f32
    %71 = vector.broadcast %cst_33 : f32 to vector<8x128xf32>
    %72 = arith.addf %71, %70 : vector<8x128xf32>
    %73 = arith.divf %71, %72 : vector<8x128xf32>
    %74 = arith.mulf %65, %51 : vector<8x128xf32>
    %75 = arith.mulf %59, %67 : vector<8x128xf32>
    %76 = arith.addf %74, %75 : vector<8x128xf32>
    %77 = math.tanh %76 : vector<8x128xf32>
    %78 = arith.mulf %73, %77 : vector<8x128xf32>
    %c0_34 = arith.constant 0 : index
    %c0_35 = arith.constant 0 : index
    %79 = vector.load %arg9[%c0_34, %c0_35] : memref<8x128xf32, #tpu.memory_space<vmem>>, vector<8x128xf32>
    tpu.vector_store %arg9[%c0_34, %c0_35], %78 {strides = array<i32>} : memref<8x128xf32, #tpu.memory_space<vmem>>, vector<8x128xf32>,
    %c0_36 = arith.constant 0 : index
    %c0_37 = arith.constant 0 : index
    %80 = vector.load %arg10[%c0_36, %c0_37] : memref<8x128xf32, #tpu.memory_space<vmem>>, vector<8x128xf32>
    tpu.vector_store %arg10[%c0_36, %c0_37], %76 {strides = array<i32>} : memref<8x128xf32, #tpu.memory_space<vmem>>, vector<8x128xf32>,
    %c2_i32 = arith.constant 2 : i32
    %c8_i32_38 = arith.constant 8 : i32
    %81 = arith.muli %c2_i32, %c8_i32_38 : i32
    %82 = tpu.assume_multiple %81, 8 : i32
    %83 = arith.index_cast %82 : i32 to index
    %c0_39 = arith.constant 0 : index
    %84 = vector.load %arg8[%83, %c0_39] : memref<32x512xf32, #tpu.memory_space<vmem>>, vector<8x512xf32>
    %c0_40 = arith.constant 0 : index
    %c0_41 = arith.constant 0 : index
    %85 = vector.load %arg9[%c0_40, %c0_41] : memref<8x128xf32, #tpu.memory_space<vmem>>, vector<8x128xf32>
    %c0_42 = arith.constant 0 : index
    %c0_43 = arith.constant 0 : index
    %86 = vector.load %arg10[%c0_42, %c0_43] : memref<8x128xf32, #tpu.memory_space<vmem>>, vector<8x128xf32>
    %cst_44 = arith.constant dense<0.000000e+00> : vector<8x512xf32>
    %87 = tpu.matmul %85, %10, %cst_44 {dimension_numbers = #tpu.dot_dimension_numbers<[1], [0], [0], [1], [0, 0, 1, 1], [], []>} : vector<8x128xf32>, vector<128x512xf32>, vector<8x512xf32> -> vector<8x512xf32>
    %88 = arith.addf %84, %87 : vector<8x512xf32>
    %89 = vector.extract_strided_slice %88 {offsets = [0, 0], sizes = [8, 128], strides = [1, 1]} : vector<8x512xf32> to vector<8x128xf32>
    %90 = arith.negf %89 : vector<8x128xf32>
    %91 = math.exp %90 : vector<8x128xf32>
    %cst_45 = arith.constant 1.000000e+00 : f32
    %92 = vector.broadcast %cst_45 : f32 to vector<8x128xf32>
    %93 = arith.addf %92, %91 : vector<8x128xf32>
    %94 = arith.divf %92, %93 : vector<8x128xf32>
    %95 = vector.extract_strided_slice %88 {offsets = [0, 128], sizes = [8, 128], strides = [1, 1]} : vector<8x512xf32> to vector<8x128xf32>
    %96 = arith.negf %95 : vector<8x128xf32>
    %97 = math.exp %96 : vector<8x128xf32>
    %cst_46 = arith.constant 1.000000e+00 : f32
    %98 = vector.broadcast %cst_46 : f32 to vector<8x128xf32>
    %99 = arith.addf %98, %97 : vector<8x128xf32>
    %100 = arith.divf %98, %99 : vector<8x128xf32>
    %101 = vector.extract_strided_slice %88 {offsets = [0, 256], sizes = [8, 128], strides = [1, 1]} : vector<8x512xf32> to vector<8x128xf32>
    %102 = math.tanh %101 : vector<8x128xf32>
    %103 = vector.extract_strided_slice %88 {offsets = [0, 384], sizes = [8, 128], strides = [1, 1]} : vector<8x512xf32> to vector<8x128xf32>
    %104 = arith.negf %103 : vector<8x128xf32>
    %105 = math.exp %104 : vector<8x128xf32>
    %cst_47 = arith.constant 1.000000e+00 : f32
    %106 = vector.broadcast %cst_47 : f32 to vector<8x128xf32>
    %107 = arith.addf %106, %105 : vector<8x128xf32>
    %108 = arith.divf %106, %107 : vector<8x128xf32>
    %109 = arith.mulf %100, %86 : vector<8x128xf32>
    %110 = arith.mulf %94, %102 : vector<8x128xf32>
    %111 = arith.addf %109, %110 : vector<8x128xf32>
    %112 = math.tanh %111 : vector<8x128xf32>
    %113 = arith.mulf %108, %112 : vector<8x128xf32>
    %c0_48 = arith.constant 0 : index
    %c0_49 = arith.constant 0 : index
    %114 = vector.load %arg9[%c0_48, %c0_49] : memref<8x128xf32, #tpu.memory_space<vmem>>, vector<8x128xf32>
    tpu.vector_store %arg9[%c0_48, %c0_49], %113 {strides = array<i32>} : memref<8x128xf32, #tpu.memory_space<vmem>>, vector<8x128xf32>,
    %c0_50 = arith.constant 0 : index
    %c0_51 = arith.constant 0 : index
    %115 = vector.load %arg10[%c0_50, %c0_51] : memref<8x128xf32, #tpu.memory_space<vmem>>, vector<8x128xf32>
    tpu.vector_store %arg10[%c0_50, %c0_51], %111 {strides = array<i32>} : memref<8x128xf32, #tpu.memory_space<vmem>>, vector<8x128xf32>,
    %c3_i32 = arith.constant 3 : i32
    %c8_i32_52 = arith.constant 8 : i32
    %116 = arith.muli %c3_i32, %c8_i32_52 : i32
    %117 = tpu.assume_multiple %116, 8 : i32
    %118 = arith.index_cast %117 : i32 to index
    %c0_53 = arith.constant 0 : index
    %119 = vector.load %arg8[%118, %c0_53] : memref<32x512xf32, #tpu.memory_space<vmem>>, vector<8x512xf32>
    %c0_54 = arith.constant 0 : index
    %c0_55 = arith.constant 0 : index
    %120 = vector.load %arg9[%c0_54, %c0_55] : memref<8x128xf32, #tpu.memory_space<vmem>>, vector<8x128xf32>
    %c0_56 = arith.constant 0 : index
    %c0_57 = arith.constant 0 : index
    %121 = vector.load %arg10[%c0_56, %c0_57] : memref<8x128xf32, #tpu.memory_space<vmem>>, vector<8x128xf32>
    %cst_58 = arith.constant dense<0.000000e+00> : vector<8x512xf32>
    %122 = tpu.matmul %120, %10, %cst_58 {dimension_numbers = #tpu.dot_dimension_numbers<[1], [0], [0], [1], [0, 0, 1, 1], [], []>} : vector<8x128xf32>, vector<128x512xf32>, vector<8x512xf32> -> vector<8x512xf32>
    %123 = arith.addf %119, %122 : vector<8x512xf32>
    %124 = vector.extract_strided_slice %123 {offsets = [0, 0], sizes = [8, 128], strides = [1, 1]} : vector<8x512xf32> to vector<8x128xf32>
    %125 = arith.negf %124 : vector<8x128xf32>
    %126 = math.exp %125 : vector<8x128xf32>
    %cst_59 = arith.constant 1.000000e+00 : f32
    %127 = vector.broadcast %cst_59 : f32 to vector<8x128xf32>
    %128 = arith.addf %127, %126 : vector<8x128xf32>
    %129 = arith.divf %127, %128 : vector<8x128xf32>
    %130 = vector.extract_strided_slice %123 {offsets = [0, 128], sizes = [8, 128], strides = [1, 1]} : vector<8x512xf32> to vector<8x128xf32>
    %131 = arith.negf %130 : vector<8x128xf32>
    %132 = math.exp %131 : vector<8x128xf32>
    %cst_60 = arith.constant 1.000000e+00 : f32
    %133 = vector.broadcast %cst_60 : f32 to vector<8x128xf32>
    %134 = arith.addf %133, %132 : vector<8x128xf32>
    %135 = arith.divf %133, %134 : vector<8x128xf32>
    %136 = vector.extract_strided_slice %123 {offsets = [0, 256], sizes = [8, 128], strides = [1, 1]} : vector<8x512xf32> to vector<8x128xf32>
    %137 = math.tanh %136 : vector<8x128xf32>
    %138 = vector.extract_strided_slice %123 {offsets = [0, 384], sizes = [8, 128], strides = [1, 1]} : vector<8x512xf32> to vector<8x128xf32>
    %139 = arith.negf %138 : vector<8x128xf32>
    %140 = math.exp %139 : vector<8x128xf32>
    %cst_61 = arith.constant 1.000000e+00 : f32
    %141 = vector.broadcast %cst_61 : f32 to vector<8x128xf32>
    %142 = arith.addf %141, %140 : vector<8x128xf32>
    %143 = arith.divf %141, %142 : vector<8x128xf32>
    %144 = arith.mulf %135, %121 : vector<8x128xf32>
    %145 = arith.mulf %129, %137 : vector<8x128xf32>
    %146 = arith.addf %144, %145 : vector<8x128xf32>
    %147 = math.tanh %146 : vector<8x128xf32>
    %148 = arith.mulf %143, %147 : vector<8x128xf32>
    %c0_62 = arith.constant 0 : index
    %c0_63 = arith.constant 0 : index
    %149 = vector.load %arg9[%c0_62, %c0_63] : memref<8x128xf32, #tpu.memory_space<vmem>>, vector<8x128xf32>
    tpu.vector_store %arg9[%c0_62, %c0_63], %148 {strides = array<i32>} : memref<8x128xf32, #tpu.memory_space<vmem>>, vector<8x128xf32>,
    %c0_64 = arith.constant 0 : index
    %c0_65 = arith.constant 0 : index
    %150 = vector.load %arg10[%c0_64, %c0_65] : memref<8x128xf32, #tpu.memory_space<vmem>>, vector<8x128xf32>
    tpu.vector_store %arg10[%c0_64, %c0_65], %146 {strides = array<i32>} : memref<8x128xf32, #tpu.memory_space<vmem>>, vector<8x128xf32>,
    %c4_i32 = arith.constant 4 : i32
    %c1_i32_66 = arith.constant 1 : i32
    %151 = arith.cmpi eq, %arg0, %c1_i32_66 : i32
    %152 = arith.extui %151 : i1 to i32
    %c0_i32_67 = arith.constant 0 : i32
    %153 = arith.cmpi ne, %152, %c0_i32_67 : i32
    scf.if %153 {
      %c0_68 = arith.constant 0 : index
      %c0_69 = arith.constant 0 : index
      %154 = vector.load %arg9[%c0_68, %c0_69] : memref<8x128xf32, #tpu.memory_space<vmem>>, vector<8x128xf32>
      %c0_70 = arith.constant 0 : index
      %c0_71 = arith.constant 0 : index
      %155 = vector.load %arg5[%c0_70, %c0_71] : memref<128x128xf32, #tpu.memory_space<vmem>>, vector<128x128xf32>
      %cst_72 = arith.constant dense<0.000000e+00> : vector<8x128xf32>
      %156 = tpu.matmul %154, %155, %cst_72 {dimension_numbers = #tpu.dot_dimension_numbers<[1], [0], [0], [1], [0, 0, 1, 1], [], []>} : vector<8x128xf32>, vector<128x128xf32>, vector<8x128xf32> -> vector<8x128xf32>
      %c0_73 = arith.constant 0 : index
      %c0_74 = arith.constant 0 : index
      %157 = vector.load %arg6[%c0_73, %c0_74] : memref<1x128xf32, #tpu.memory_space<vmem>>, vector<1x128xf32>
      %158 = vector.broadcast %157 : vector<1x128xf32> to vector<8x128xf32>
      %159 = arith.addf %156, %158 : vector<8x128xf32>
      %c0_75 = arith.constant 0 : index
      %c0_76 = arith.constant 0 : index
      %160 = vector.load %arg7[%c0_75, %c0_76] : memref<8x128xf32, #tpu.memory_space<vmem>>, vector<8x128xf32>
      tpu.vector_store %arg7[%c0_75, %c0_76], %159 {strides = array<i32>} : memref<8x128xf32, #tpu.memory_space<vmem>>, vector<8x128xf32>,
    } else {
    }
    return
  }
  func.func @transform_0(%arg0: i32) -> (i32, i32) {
    %c0_i32 = arith.constant 0 : i32
    %c0_i32_0 = arith.constant 0 : i32
    return %arg0, %c0_i32 : i32, i32
  }
  func.func @transform_1(%arg0: i32) -> (i32, i32) {
    %c0_i32 = arith.constant 0 : i32
    %c0_i32_0 = arith.constant 0 : i32
    %c0_i32_1 = arith.constant 0 : i32
    return %c0_i32, %c0_i32_0 : i32, i32
  }
  func.func @transform_2(%arg0: i32) -> (i32, i32) {
    %c0_i32 = arith.constant 0 : i32
    %c0_i32_0 = arith.constant 0 : i32
    %c0_i32_1 = arith.constant 0 : i32
    return %c0_i32, %c0_i32_0 : i32, i32
  }
  func.func @transform_3(%arg0: i32) -> (i32, i32) {
    %c0_i32 = arith.constant 0 : i32
    %c0_i32_0 = arith.constant 0 : i32
    %c0_i32_1 = arith.constant 0 : i32
    return %c0_i32, %c0_i32_0 : i32, i32
  }
  func.func @transform_4(%arg0: i32) -> (i32, i32) {
    %c0_i32 = arith.constant 0 : i32
    %c0_i32_0 = arith.constant 0 : i32
    %c0_i32_1 = arith.constant 0 : i32
    return %c0_i32, %c0_i32_0 : i32, i32
  }
  func.func @transform_5(%arg0: i32) -> (i32, i32) {
    %c0_i32 = arith.constant 0 : i32
    %c0_i32_0 = arith.constant 0 : i32
    %c0_i32_1 = arith.constant 0 : i32
    return %c0_i32, %c0_i32_0 : i32, i32
  }
  func.func @transform_6(%arg0: i32) -> (i32, i32) {
    %c0_i32 = arith.constant 0 : i32
    %c0_i32_0 = arith.constant 0 : i32
    %c0_i32_1 = arith.constant 0 : i32
    return %c0_i32, %c0_i32_0 : i32, i32
  }
}

</mosaic_0001>

<bundles_post_ra>
// kernel: lstm_model_forward.1
= control target key start
LH: loop header
LB: loop body
LE: loop exit
PB: predicated region body
PF: predicated region fallthrough
CT: control target
= control target key end

     0   :  { %11 = vsyncpa [#allocation6], 0  ;;  %s1997_s21 = smov 0   ;;  %s2376_s0 = inlined_call_operand.vmem [shape: f32[64,8], index: 0, kind: input, shape index: {}]   ;;  %s2377_s1 = inlined_call_operand.vmem [shape: f32[8,512], index: 1, kind: input, shape index: {}]   ;;  %s2378_s2 = inlined_call_operand.hbm [shape: f32[128,512], index: 2, kind: input, shape index: {}]   ;;  %s2379_s3 = inlined_call_operand.vmem [shape: f32[1,512], index: 3, kind: input, shape index: {}]   ;;  %s2380_s4 = inlined_call_operand.vmem [shape: f32[128,128], index: 4, kind: input, shape index: {}]   ;;  %s2381_s5 = inlined_call_operand.vmem [shape: f32[1,128], index: 5, kind: input, shape index: {}]   ;;  %s2382_s6 = inlined_call_operand.vmem [shape: f32[8,128], index: 6, kind: output, shape index: {}]  }
   0x1 LB: > { %s2003_s22 = sadd.s32 4294967295, %s1952_s21   ;;  %p1428_p0 = scmp.ge.s32.totalorder %s1952_s21, 1  ;;  %s1952_s21 = sphi %s1997_s21, %s17_s21  }
   0x2   : > { %p174_p1 = scmp.lt.s32.totalorder %s1952_s21, 3  ;;  %s1954_s23 = smov [#allocation5]  }
   0x3   : > { %s189_s24 = sshll.u32 %s1954_s23, 4  ;;  %p2383_p4 = scmp.eq.s32.totalorder %s2003_s22, 0  ;;  %s190_s24 = int_to_ptr.vmem [resolvable:$true] %s189_s24 }
   0x4   : > { %p2008_p3 = pnand %p1428_p0, %p174_p1  ;;  %s1914_s29 = scalar_lea.hbm %s2378_s2, 8192 }
   0x5   : > { %p1915_p7 = scmp.ne.s32.totalorder %s2378_s2, %s1914_s29  ;;  %p1921_p11 = scmp.lt.u32.totalorder %s1914_s29, %s2378_s2 }
   0x6   : > { %s2385_s25 = scalar_select %p2008_p3, 1, 0 }
   0x7   : > { %p1828_p5 = pneg %p2008_p3 }
   0x9   : > { %p2017_p6 = pnand %p2383_p4, %p1828_p5 }
   0xb   : > { %p1916_p8 = pneg %p2017_p6 }
   0xd   : > { %p1917_p9 = pnand %p1916_p8, %p1915_p7 }
   0xf   : > { %p1918_p10 = pneg %p1917_p9 }
  0x11   : > { %p1923_p12 = pnand %p1921_p11, %p1918_p10 }
  0x13   : > { %1926 = shalt.err (!%p1923_p12)
}
  0x14   : > { %s1927_s10 = scalar_lea.vmem %s190_s24, 8192  ;;  %p1935_p5 = scmp.lt.s32.totalorder %s190_s24, %s190_s24 }
  0x15   : > { %p1928_p13 = scmp.ne.s32.totalorder %s190_s24, %s1927_s10  ;;  %p1936_p2 = scmp.lt.s32.totalorder %s1927_s10, %s1927_s10 }
  0x17   : > { %p1930_p0 = pnand %p1928_p13, %p1916_p8  ;;  %p1937_p4 = por %p1936_p2, %p1935_p5 }
  0x19   : > { %p1931_p1 = pneg %p1930_p0 }
  0x1b   : > { %p1938_p3 = pnand %p1937_p4, %p1931_p1 }
  0x1d   : > { %1941 = shalt.err (!%p1938_p3)
}
  0x1e   : > { %s1955_s11 = smov 512   ;;  %s1956_s12 = smov 32  }
  0x1f   : > { %1831 = dma.hbm_to_vmem [thread:$0]  (!%p2017_p6), %s2378_s2, 8192, %s190_s24, [#allocation6], %s1955_s11, %s1955_s11, %s1956_s12  }
  0x20   : > { %p2387_p7 = scmp.ne.s32.totalorder %s2385_s25, 0 }
  0x21   : > { %p2388_p9 = scmp.eq.s32.totalorder (!%p2387_p7), %s2003_s22, 0 }
  0x22   : > { %223 = sbr.rel (%p2387_p7) target bundleno = 1344 (0x540), region = 44 }
  0x29   : > { %1947 = dma.done.wait (%p2388_p9), [#allocation6], 8192   ;;  %p2389_p8 = pmov %p2388_p9 }
  0x2a   : > { %s1433_s15 = sshll.u32 %s2003_s22, 2  ;;  %p2390_p3 = scmp.ne.s32.totalorder %s2003_s22, 0 }
  0x2b   : > { %1949 = vsyncadd (%p2389_p8), [#allocation6], 4294959104  ;;  %p249_p2 = scmp.lt.s32.totalorder %s1433_s15, 7  ;;  %v1957_v0 = vmov (!%p2390_p3), 0.0  }
  0x2c   : > { %257 = sbr.rel (%p2390_p3) target bundleno = 51 (0x33), region = 52  ;;  %258 = vst [vmem:[#allocation3] sm:$0xff] (!%p2390_p3), %v1957_v0  ;;  %259 = vst [vmem:[#allocation4] sm:$0xff] (!%p2390_p3), %v1957_v0 }
  0x2d   : > { %s2392_s15 = smov (!%p249_p2, %s1433_s15), 7 }
  0x2e   : > { %s1434_s16 = sshll.u32 %s2392_s15, 3 }
  0x2f   : > { %s2047_s19 = scalar_lea.vmem %s2376_s0, %s1434_s16 }
  0x33 PF: > { %v265_v1 = vld [vmem:[%s2377_s1 + $0x8] sm:$0xff]  ;;  %v267_v2 = vld [vmem:[%s2377_s1 + $0x18] sm:$0xff]  ;;  %v264_v3 = vld [vmem:[%s2377_s1] sm:$0xff]  ;;  %vm290_vm0 = vcmask 64512   ;;  %v1958_v11 = vmov 0.0   ;;  %p1456_p4 = scmp.ne.s32.totalorder %s2003_s22, 1 }
  0x34   : > { %303 = vmatprep.subr.mxu0 %v265_v1  ;;  %392 = vmatprep.subr.mxu1 %v267_v2  ;;  %v266_v4 = vld [vmem:[%s2377_s1 + $0x10] sm:$0xff]  ;;  %v498_v5 = vld [vmem:[#allocation5 + $0x8] sm:$0xff]  ;;  %v500_v8 = vld [vmem:[#allocation5 + $0x18] sm:$0xff]  ;;  %vm1960_vm1 = vmmov (!%p1456_p4), 0  }
  0x35   : > { %v502_v6 = vld [vmem:[#allocation5 + $0x28] sm:$0xff]  ;;  %304 = vmatpush1.msra.mxu0 %v264_v3  ;;  %393 = vmatpush1.msra.mxu1 %v266_v4  ;;  %v504_v9 = vld [vmem:[#allocation5 + $0x38] sm:$0xff]  ;;  %v260_v10 = vld [vmem:[%s2047_s19] sm:$0xff] }
  0x36   : > { %v2063_v7 = vpack.c.bf16 %v502_v6, %v498_v5  ;;  %367 = vmatprep.mubr.f32.mxu0 %v1958_v11  ;;  %456 = vmatprep.mubr.f32.mxu1 %v1958_v11  ;;  %v2068_v12 = vpack.c.bf16 %v504_v9, %v500_v8  ;;  %v497_v13 = vld [vmem:[#allocation5] sm:$0xff]  ;;  %v499_v15 = vld [vmem:[#allocation5 + $0x10] sm:$0xff]  ;;  %v506_v18 = vld [vmem:[#allocation5 + $0x48] sm:$0xff] }
  0x37   : > { %v501_v14 = vld [vmem:[#allocation5 + $0x20] sm:$0xff]  ;;  %1436 = vmatmul.mubr.msk.f32.vlgmr.msra.gmra.mrb[0].mxu0 %vm290_vm0, %v260_v10  ;;  %v503_v17 = vld [vmem:[#allocation5 + $0x30] sm:$0xff]  ;;  %v510_v19 = vld [vmem:[#allocation5 + $0x68] sm:$0xff]  ;;  %1440 = vmatmul.mubr.msk.f32.vlgmr.msra.gmra.mrb[0].mxu1 %vm290_vm0, %v260_v10 }
  0x38   : > { %1513 = vmatprep.subr.bf16.mxu0 %v2063_v7  ;;  %v2072_v16 = vpack.c.bf16 %v501_v14, %v497_v13  ;;  %1545 = vmatprep.subr.bf16.mxu1 %v2068_v12  ;;  %v2076_v20 = vpack.c.bf16 %v503_v17, %v499_v15  ;;  %v2078_v21 = vpack.c.bf16 %v510_v19, %v506_v18  ;;  %v508_v22 = vld [vmem:[#allocation5 + $0x58] sm:$0xff]  ;;  %v505_v24 = vld [vmem:[#allocation5 + $0x40] sm:$0xff]  ;;  %v507_v27 = vld [vmem:[#allocation5 + $0x50] sm:$0xff] }
  0x39   : > { %v512_v23 = vld [vmem:[#allocation5 + $0x78] sm:$0xff]  ;;  %v509_v26 = vld [vmem:[#allocation5 + $0x60] sm:$0xff]  ;;  %v511_v28 = vld [vmem:[#allocation5 + $0x70] sm:$0xff]  ;;  %373 = vmatprep.mubr.f32.mxu0 %v1958_v11  ;;  %462 = vmatprep.mubr.f32.mxu1 %v1958_v11 }
  0x3a   : > { %1515 = vmatpush1.bf16.msra.mxu0 %v2072_v16  ;;  %v2081_v25 = vpack.c.bf16 %v512_v23, %v508_v22  ;;  %1547 = vmatpush1.bf16.msra.mxu1 %v2076_v20  ;;  %v2086_v29 = vpack.c.bf16 %v509_v26, %v505_v24  ;;  %v2088_v30 = vpack.c.bf16 %v511_v28, %v507_v27  ;;  %v514_v31 = vld [vmem:[#allocation5 + $0x88] sm:$0xff]  ;;  %v516_v33 = vld [vmem:[#allocation5 + $0x98] sm:$0xff]  ;;  %v513_v36 = vld [vmem:[#allocation5 + $0x80] sm:$0xff] }
  0x3b   : > { %1517 = vmatprep.subr.bf16.mxu0 %v2078_v21  ;;  %v518_v32 = vld [vmem:[#allocation5 + $0xa8] sm:$0xff]  ;;  %v520_v35 = vld [vmem:[#allocation5 + $0xb8] sm:$0xff]  ;;  %v517_v37 = vld [vmem:[#allocation5 + $0xa0] sm:$0xff] }
  0x3c   : > { %1549 = vmatprep.subr.bf16.mxu1 %v2081_v25  ;;  %v2091_v34 = vpack.c.bf16 %v518_v32, %v514_v31  ;;  %v2094_v38 = vpack.c.bf16 %v520_v35, %v516_v33  ;;  %v515_v39 = vld [vmem:[#allocation5 + $0x90] sm:$0xff]  ;;  %v522_v41 = vld [vmem:[#allocation5 + $0xc8] sm:$0xff]  ;;  %v2097_v42 = vpack.c.bf16 %v517_v37, %v513_v36  ;;  %v524_v44 = vld [vmem:[#allocation5 + $0xd8] sm:$0xff] }
  0x3d   : > { %v519_v40 = vld [vmem:[#allocation5 + $0xb0] sm:$0xff]  ;;  %v526_v43 = vld [vmem:[#allocation5 + $0xe8] sm:$0xff]  ;;  %v528_v45 = vld [vmem:[#allocation5 + $0xf8] sm:$0xff] }
  0x3e   : > { %1519 = vmatpush1.bf16.msra.mxu0 %v2086_v29  ;;  %1551 = vmatpush1.bf16.msra.mxu1 %v2088_v30  ;;  %v2101_v46 = vpack.c.bf16 %v519_v40, %v515_v39  ;;  %v2103_v47 = vpack.c.bf16 %v526_v43, %v522_v41  ;;  %v521_v48 = vld [vmem:[#allocation5 + $0xc0] sm:$0xff]  ;;  %v523_v50 = vld [vmem:[#allocation5 + $0xd0] sm:$0xff]  ;;  %v2106_v51 = vpack.c.bf16 %v528_v45, %v524_v44  ;;  %v530_v53 = vld [vmem:[#allocation5 + $0x108] sm:$0xff] }
  0x3f   : > { %1521 = vmatprep.subr.bf16.mxu0 %v2091_v34  ;;  %v525_v49 = vld [vmem:[#allocation5 + $0xe0] sm:$0xff]  ;;  %1553 = vmatprep.subr.bf16.mxu1 %v2094_v38  ;;  %v527_v52 = vld [vmem:[#allocation5 + $0xf0] sm:$0xff]  ;;  %v534_v54 = vld [vmem:[#allocation5 + $0x128] sm:$0xff] }
  0x40   : > { %v532_v55 = vld [vmem:[#allocation5 + $0x118] sm:$0xff]  ;;  %v2109_v57 = vpack.c.bf16 %v525_v49, %v521_v48  ;;  %v529_v58 = vld [vmem:[#allocation5 + $0x100] sm:$0xff]  ;;  %v2113_v59 = vpack.c.bf16 %v527_v52, %v523_v50  ;;  %v2115_v60 = vpack.c.bf16 %v534_v54, %v530_v53  ;;  %v531_v62 = vld [vmem:[#allocation5 + $0x110] sm:$0xff] }
  0x41   : > { %v536_v56 = vld [vmem:[#allocation5 + $0x138] sm:$0xff]  ;;  %v533_v61 = vld [vmem:[#allocation5 + $0x120] sm:$0xff]  ;;  %v535_v1 = vld [vmem:[#allocation5 + $0x130] sm:$0xff] }
  0x42   : > { %1523 = vmatpush1.bf16.msra.mxu0 %v2097_v42  ;;  %1555 = vmatpush1.bf16.msra.mxu1 %v2101_v46  ;;  %v261_v63 = vld [vmem:[%s2047_s19 + $0x8] sm:$0xff]  ;;  %v2119_v0 = vpack.c.bf16 %v536_v56, %v532_v55  ;;  %v538_v2 = vld [vmem:[#allocation5 + $0x148] sm:$0xff]  ;;  %v2125_v6 = vpack.c.bf16 %v533_v61, %v529_v58  ;;  %v262_v8 = vld [vmem:[%s2047_s19 + $0x10] sm:$0xff]  ;;  %v2131_v9 = vpack.c.bf16 %v535_v1, %v531_v62  ;;  %v270_v61 = vlaneseq }
  0x43   : > { %1525 = vmatprep.subr.bf16.mxu0 %v2103_v47  ;;  %1557 = vmatprep.subr.bf16.mxu1 %v2106_v51  ;;  %v542_v3 = vld [vmem:[#allocation5 + $0x168] sm:$0xff]  ;;  %v540_v4 = vld [vmem:[#allocation5 + $0x158] sm:$0xff]  ;;  %v537_v13 = vld [vmem:[#allocation5 + $0x140] sm:$0xff] }
  0x44   : > { %1437 = vmatmul.mubr.msk.f32.gmra.mrb[2].mxu0 %vm290_vm0, %v261_v63  ;;  %1441 = vmatmul.mubr.msk.f32.gmra.mrb[2].mxu1 %vm290_vm0, %v261_v63  ;;  %v544_v5 = vld [vmem:[#allocation5 + $0x178] sm:$0xff]  ;;  %v2133_v10 = vpack.c.bf16 %v542_v3, %v538_v2  ;;  %v541_v14 = vld [vmem:[#allocation5 + $0x160] sm:$0xff]  ;;  %v539_v15 = vld [vmem:[#allocation5 + $0x150] sm:$0xff]  ;;  %v271_v62 = vshrl.u32 %v270_v61, 7 }
  0x45   : > { %379 = vmatprep.mubr.f32.mxu0 %v1958_v11  ;;  %468 = vmatprep.mubr.f32.mxu1 %v1958_v11  ;;  %v2136_v17 = vpack.c.bf16 %v544_v5, %v540_v4  ;;  %v543_v18 = vld [vmem:[#allocation5 + $0x170] sm:$0xff]  ;;  %v546_v19 = vld [vmem:[#allocation5 + $0x188] sm:$0xff]  ;;  %v548_v23 = vld [vmem:[#allocation5 + $0x198] sm:$0xff]  ;;  %v2143_v27 = vpack.c.bf16 %v541_v14, %v537_v13 }
  0x46   : > { %1527 = vmatpush1.bf16.msra.mxu0 %v2109_v57  ;;  %1559 = vmatpush1.bf16.msra.mxu1 %v2113_v59  ;;  %v550_v22 = vld [vmem:[#allocation5 + $0x1a8] sm:$0xff]  ;;  %v552_v24 = vld [vmem:[#allocation5 + $0x1b8] sm:$0xff]  ;;  %v2148_v28 = vpack.c.bf16 %v543_v18, %v539_v15  ;;  %v545_v32 = vld [vmem:[#allocation5 + $0x180] sm:$0xff]  ;;  %v272_v63 = vsub.s32 0, %v271_v62  ;;  %v276_v2 = vsub.s32 1, %v271_v62 }
  0x47   : > { %1529 = vmatprep.subr.bf16.mxu0 %v2115_v60  ;;  %1561 = vmatprep.subr.bf16.mxu1 %v2119_v0  ;;  %v263_v26 = vld [vmem:[%s2047_s19 + $0x18] sm:$0xff]  ;;  %v2150_v31 = vpack.c.bf16 %v550_v22, %v546_v19  ;;  %v549_v33 = vld [vmem:[#allocation5 + $0x1a0] sm:$0xff]  ;;  %v547_v35 = vld [vmem:[#allocation5 + $0x190] sm:$0xff]  ;;  %v2153_v36 = vpack.c.bf16 %v552_v24, %v548_v23 }
  0x48   : > { %1438 = vmatmul.mubr.msk.f32.gmra.mrb[4].mxu0 %vm290_vm0, %v262_v8  ;;  %1442 = vmatmul.mubr.msk.f32.gmra.mrb[4].mxu1 %vm290_vm0, %v262_v8  ;;  %v551_v37 = vld [vmem:[#allocation5 + $0x1b0] sm:$0xff]  ;;  %v554_v39 = vld [vmem:[#allocation5 + $0x1c8] sm:$0xff]  ;;  %v556_v41 = vld [vmem:[#allocation5 + $0x1d8] sm:$0xff]  ;;  %v2159_v44 = vpack.c.bf16 %v549_v33, %v545_v32  ;;  %v284_v8 = vsub.s32 3, %v271_v62 }
  0x49   : > { %385 = vmatprep.mubr.f32.mxu0 %v1958_v11  ;;  %474 = vmatprep.mubr.f32.mxu1 %v1958_v11  ;;  %v558_v40 = vld [vmem:[#allocation5 + $0x1e8] sm:$0xff]  ;;  %v560_v43 = vld [vmem:[#allocation5 + $0x1f8] sm:$0xff]  ;;  %v2164_v45 = vpack.c.bf16 %v551_v37, %v547_v35  ;;  %v553_v49 = vld [vmem:[#allocation5 + $0x1c0] sm:$0xff] }
  0x4a   : > { %1531 = vmatpush1.bf16.msra.mxu0 %v2125_v6  ;;  %1563 = vmatpush1.bf16.msra.mxu1 %v2131_v9  ;;  %v2166_v48 = vpack.c.bf16 %v558_v40, %v554_v39  ;;  %v557_v50 = vld [vmem:[#allocation5 + $0x1e0] sm:$0xff]  ;;  %v2169_v52 = vpack.c.bf16 %v560_v43, %v556_v41  ;;  %v555_v53 = vld [vmem:[#allocation5 + $0x1d0] sm:$0xff] }
  0x4b   : > { %1533 = vmatprep.subr.bf16.mxu0 %v2133_v10  ;;  %1565 = vmatprep.subr.bf16.mxu1 %v2136_v17  ;;  %v559_v54 = vld [vmem:[#allocation5 + $0x1f0] sm:$0xff]  ;;  %v2172_v55 = vpack.c.bf16 %v557_v50, %v553_v49 }
  0x4c   : > { %1439 = vmatmul.mubr.msk.f32.gmra.mrb[6].mxu0 %vm290_vm0, %v263_v26  ;;  %1443 = vmatmul.mubr.msk.f32.gmra.mrb[6].mxu1 %vm290_vm0, %v263_v26  ;;  %v2176_v56 = vpack.c.bf16 %v559_v54, %v555_v53  ;;  %v568_v58 = vld [vmem:[#allocation3] sm:$0xff]  ;;  %v280_v26 = vsub.s32 2, %v271_v62  ;;  %v569_v53 = vld [vmem:[#allocation4] sm:$0xff] }
  0x4d   : > { %634 = vmatprep.mubr.f32.mxu0 %v1958_v11  ;;  %705 = vmatprep.mubr.f32.mxu1 %v1958_v11  ;;  %v268_v1 = vld [vmem:[%s2379_s3] sm:$0xf] }
  0x4e   : > { %1535 = vmatpush1.bf16.msra.mxu0 %v2143_v27  ;;  %1567 = vmatpush1.bf16.msra.mxu1 %v2148_v28  ;;  %v2220_v3 = vrot.slane %v268_v1, %v272_v63  ;;  %v2222_v4 = vrot.slane %v268_v1, %v276_v2  ;;  %v2226_v24 = vrot.slane %v268_v1, %v284_v8 }
  0x4f   : > { %1537 = vmatprep.subr.bf16.mxu0 %v2150_v31  ;;  %1569 = vmatprep.subr.bf16.mxu1 %v2153_v36  ;;  %v2229_v33 = vrot.slane %v268_v1, %v280_v26 }
  0x52   : > { %1539 = vmatpush1.bf16.msra.mxu0 %v2159_v44  ;;  %1571 = vmatpush1.bf16.msra.mxu1 %v2164_v45 }
  0x53   : > { %1541 = vmatprep.subr.bf16.mxu0 %v2166_v48  ;;  %1573 = vmatprep.subr.bf16.mxu1 %v2169_v52 }
  0x56   : > { %1543 = vmatpush1.bf16.msra.mxu0 %v2172_v55  ;;  %1575 = vmatpush1.bf16.msra.mxu1 %v2176_v56 }
  0x57   : > { %1577 = vmatprep.subr.bf16.mxu0 %v2063_v7  ;;  %1609 = vmatprep.subr.bf16.mxu1 %v2068_v12 }
  0x59   : > { %635 = vmatmul.mubr.f32.vlgmr.msra.gmra.mrb[0].mxu0 %v568_v58  ;;  %706 = vmatmul.mubr.f32.vlgmr.msra.gmra.mrb[0].mxu1 %v568_v58 }
  0x5a   : > { %1579 = vmatpush1.bf16.msra.mxu0 %v2072_v16  ;;  %1611 = vmatpush1.bf16.msra.mxu1 %v2076_v20 }
  0x5b   : > { %1581 = vmatprep.subr.bf16.mxu0 %v2078_v21  ;;  %1613 = vmatprep.subr.bf16.mxu1 %v2081_v25 }
  0x5c   : > { %815 = vmatprep.mubr.f32.mxu0 %v1958_v11  ;;  %886 = vmatprep.mubr.f32.mxu1 %v1958_v11 }
  0x5e   : > { %1583 = vmatpush1.bf16.msra.mxu0 %v2086_v29  ;;  %1615 = vmatpush1.bf16.msra.mxu1 %v2088_v30 }
  0x5f   : > { %1585 = vmatprep.subr.bf16.mxu0 %v2091_v34  ;;  %1617 = vmatprep.subr.bf16.mxu1 %v2094_v38 }
  0x62   : > { %1587 = vmatpush1.bf16.msra.mxu0 %v2097_v42  ;;  %1619 = vmatpush1.bf16.msra.mxu1 %v2101_v46 }
  0x63   : > { %1589 = vmatprep.subr.bf16.mxu0 %v2103_v47  ;;  %1621 = vmatprep.subr.bf16.mxu1 %v2106_v51 }
  0x66   : > { %1591 = vmatpush1.bf16.msra.mxu0 %v2109_v57  ;;  %1623 = vmatpush1.bf16.msra.mxu1 %v2113_v59 }
  0x67   : > { %1593 = vmatprep.subr.bf16.mxu0 %v2115_v60  ;;  %1625 = vmatprep.subr.bf16.mxu1 %v2119_v0 }
  0x6a   : > { %1595 = vmatpush1.bf16.msra.mxu0 %v2125_v6  ;;  %1627 = vmatpush1.bf16.msra.mxu1 %v2131_v9 }
  0x6b   : > { %1597 = vmatprep.subr.bf16.mxu0 %v2133_v10  ;;  %1629 = vmatprep.subr.bf16.mxu1 %v2136_v17 }
  0x6e   : > { %1599 = vmatpush1.bf16.msra.mxu0 %v2143_v27  ;;  %1631 = vmatpush1.bf16.msra.mxu1 %v2148_v28 }
  0x6f   : > { %1601 = vmatprep.subr.bf16.mxu0 %v2150_v31  ;;  %1633 = vmatprep.subr.bf16.mxu1 %v2153_v36 }
  0x72   : > { %1603 = vmatpush1.bf16.msra.mxu0 %v2159_v44  ;;  %1635 = vmatpush1.bf16.msra.mxu1 %v2164_v45 }
  0x73   : > { %1605 = vmatprep.subr.bf16.mxu0 %v2166_v48  ;;  %1637 = vmatprep.subr.bf16.mxu1 %v2169_v52 }
  0x76   : > { %1607 = vmatpush1.bf16.msra.mxu0 %v2172_v55  ;;  %1639 = vmatpush1.bf16.msra.mxu1 %v2176_v56 }
  0x77   : > { %1641 = vmatprep.subr.bf16.mxu0 %v2063_v7  ;;  %1673 = vmatprep.subr.bf16.mxu1 %v2068_v12 }
 0x12c   : > { %v636_v5 = vpop.f32.mrb[0].mxu0  ;;  %v707_v14 = vpop.f32.mrb[0].mxu1 }
 0x12d   : > { %v1792_v13 = vadd.f32 %v636_v5, %v2220_v3  ;;  %v638_v15 = vpop.f32.mrb[1].mxu0  ;;  %v709_v19 = vpop.f32.mrb[1].mxu1  ;;  %v1800_v37 = vadd.f32 %v707_v14, %v2229_v33 }
 0x12e   : > { %v1793_v18 = vadd.f32 %v638_v15, %v2222_v4  ;;  %v1801_v32 = vadd.f32 %v709_v19, %v2226_v24 }
 0x12f   : > { %v1444_v22 = vmul.f32 -1.442695, %v1792_v13 }
 0x130   : > { %v1445_v23 = vmul.f32 -1.442695, %v1793_v18  ;;  %v1446_v35 = vmul.f32 -1.442695, %v1801_v32 }
 0x131   : > { %1850 = vpow2.f32 %v1444_v22 }
 0x132   : > { %1852 = vpow2.f32 %v1445_v23 }
 0x133   : > { %1854 = vpow2.f32 %v1446_v35 }
 0x134   : > { %1856 = vtanh.f32 %v1800_v37 }
 0x13b   : > { %v1851_v39 = vpop.eup %1850 }
 0x13c   : > { %v1853_v40 = vpop.eup %1852  ;;  %v719_v41 = vadd.f32 1.0, %v1851_v39 }
 0x13d   : > { %v725_v43 = vadd.f32 1.0, %v1853_v40  ;;  %v1855_v49 = vpop.eup %1854 }
 0x13e   : > { %1858 = vrcp.f32 %v719_v41  ;;  %v1857_v50 = vpop.eup %1856  ;;  %v732_v62 = vadd.f32 1.0, %v1855_v49 }
 0x13f   : > { %1860 = vrcp.f32 %v725_v43 }
 0x140   : > { %1862 = vrcp.f32 %v732_v62 }
 0x148   : > { %v1859_v54 = vpop.eup %1858 }
 0x149   : > { %v1861_v58 = vpop.eup %1860  ;;  %v736_v61 = vmul.f32 %v1859_v54, %v1857_v50 }
 0x14a   : > { %v735_v63 = vmul.f32 %v1861_v58, %v569_v53  ;;  %v1863_v2 = vpop.eup %1862 }
 0x14c   : > { %v2232_v1 = vadd.f32 %v736_v61, %v735_v63 }
 0x14e   : > { %1864 = vtanh.f32 %v2232_v1 }
 0x158   : > { %v1865_v5 = vpop.eup %1864 }
 0x159   : > { %v739_v8 = vmul.f32 %v1865_v5, %v1863_v2 }
 0x15b   : > { %816 = vmatmul.mubr.f32.vlgmr.msra.gmra.mrb[2].mxu0 %v739_v8  ;;  %887 = vmatmul.mubr.f32.vlgmr.msra.gmra.mrb[2].mxu1 %v739_v8 }
 0x15c   : > { %1643 = vmatpush1.bf16.msra.mxu0 %v2072_v16  ;;  %1675 = vmatpush1.bf16.msra.mxu1 %v2076_v20 }
 0x15d   : > { %1645 = vmatprep.subr.bf16.mxu0 %v2078_v21  ;;  %1677 = vmatprep.subr.bf16.mxu1 %v2081_v25 }
 0x15e   : > { %996 = vmatprep.mubr.f32.mxu0 %v1958_v11  ;;  %1067 = vmatprep.mubr.f32.mxu1 %v1958_v11 }
 0x160   : > { %1647 = vmatpush1.bf16.msra.mxu0 %v2086_v29  ;;  %1679 = vmatpush1.bf16.msra.mxu1 %v2088_v30 }
 0x161   : > { %1649 = vmatprep.subr.bf16.mxu0 %v2091_v34  ;;  %1681 = vmatprep.subr.bf16.mxu1 %v2094_v38 }
 0x164   : > { %1651 = vmatpush1.bf16.msra.mxu0 %v2097_v42  ;;  %1683 = vmatpush1.bf16.msra.mxu1 %v2101_v46 }
 0x165   : > { %1653 = vmatprep.subr.bf16.mxu0 %v2103_v47  ;;  %1685 = vmatprep.subr.bf16.mxu1 %v2106_v51 }
 0x168   : > { %1655 = vmatpush1.bf16.msra.mxu0 %v2109_v57  ;;  %1687 = vmatpush1.bf16.msra.mxu1 %v2113_v59 }
 0x169   : > { %1657 = vmatprep.subr.bf16.mxu0 %v2115_v60  ;;  %1689 = vmatprep.subr.bf16.mxu1 %v2119_v0 }
 0x16c   : > { %1659 = vmatpush1.bf16.msra.mxu0 %v2125_v6  ;;  %1691 = vmatpush1.bf16.msra.mxu1 %v2131_v9 }
 0x16d   : > { %1661 = vmatprep.subr.bf16.mxu0 %v2133_v10  ;;  %1693 = vmatprep.subr.bf16.mxu1 %v2136_v17 }
 0x170   : > { %1663 = vmatpush1.bf16.msra.mxu0 %v2143_v27  ;;  %1695 = vmatpush1.bf16.msra.mxu1 %v2148_v28 }
 0x171   : > { %1665 = vmatprep.subr.bf16.mxu0 %v2150_v31  ;;  %1697 = vmatprep.subr.bf16.mxu1 %v2153_v36 }
 0x174   : > { %1667 = vmatpush1.bf16.msra.mxu0 %v2159_v44  ;;  %1699 = vmatpush1.bf16.msra.mxu1 %v2164_v45 }
 0x175   : > { %1669 = vmatprep.subr.bf16.mxu0 %v2166_v48  ;;  %1701 = vmatprep.subr.bf16.mxu1 %v2169_v52 }
 0x178   : > { %1671 = vmatpush1.bf16.msra.mxu0 %v2172_v55  ;;  %1703 = vmatpush1.bf16.msra.mxu1 %v2176_v56 }
 0x179   : > { %1705 = vmatprep.subr.bf16.mxu0 %v2063_v7  ;;  %1737 = vmatprep.subr.bf16.mxu1 %v2068_v12 }
 0x22e   : > { %v817_v13 = vpop.f32.mrb[2].mxu0  ;;  %v888_v14 = vpop.f32.mrb[2].mxu1 }
 0x22f   : > { %v1794_v15 = vadd.f32 %v817_v13, %v2220_v3  ;;  %v819_v18 = vpop.f32.mrb[3].mxu0  ;;  %v890_v19 = vpop.f32.mrb[3].mxu1  ;;  %v1802_v37 = vadd.f32 %v888_v14, %v2229_v33 }
 0x230   : > { %v1795_v22 = vadd.f32 %v819_v18, %v2222_v4  ;;  %v1803_v32 = vadd.f32 %v890_v19, %v2226_v24 }
 0x231   : > { %v1447_v23 = vmul.f32 -1.442695, %v1794_v15 }
 0x232   : > { %v1448_v26 = vmul.f32 -1.442695, %v1795_v22  ;;  %v1449_v35 = vmul.f32 -1.442695, %v1803_v32 }
 0x233   : > { %1866 = vpow2.f32 %v1447_v23 }
 0x234   : > { %1868 = vpow2.f32 %v1448_v26 }
 0x235   : > { %1870 = vpow2.f32 %v1449_v35 }
 0x236   : > { %1872 = vtanh.f32 %v1802_v37 }
 0x23d   : > { %v1867_v7 = vpop.eup %1866 }
 0x23e   : > { %v1869_v39 = vpop.eup %1868  ;;  %v900_v12 = vadd.f32 1.0, %v1867_v7 }
 0x23f   : > { %v906_v40 = vadd.f32 1.0, %v1869_v39  ;;  %v1871_v41 = vpop.eup %1870 }
 0x240   : > { %1874 = vrcp.f32 %v900_v12  ;;  %v1873_v43 = vpop.eup %1872  ;;  %v913_v54 = vadd.f32 1.0, %v1871_v41  ;;  %v1291_v41 = vld [vmem:[%s2380_s4 + $0x8] sm:$0xff] (!%p1456_p4) }
 0x241   : > { %1876 = vrcp.f32 %v906_v40  ;;  %v1290_v40 = vld [vmem:[%s2380_s4] sm:$0xff] (!%p1456_p4) }
 0x242   : > { %1878 = vrcp.f32 %v913_v54  ;;  %v1961_v54 = vmov (!%p1456_p4), 0.0  }
 0x24a   : > { %v1875_v49 = vpop.eup %1874 }
 0x24b   : > { %v1877_v50 = vpop.eup %1876  ;;  %v917_v53 = vmul.f32 %v1875_v49, %v1873_v43  ;;  %v1292_v43 = vld [vmem:[%s2380_s4 + $0x10] sm:$0xff] (!%p1456_p4)  ;;  %v1959_v49 = vmov (!%p1456_p4), 0.0|0.0  }
 0x24c   : > { %v916_v58 = vmul.f32 %v1877_v50, %v2232_v1  ;;  %v1879_v62 = vpop.eup %1878  ;;  %v1769_v50 = vpack.c.bf16 (!%p1456_p4), %v1291_v41, %v1290_v40 }
 0x24e   : > { %v2274_v61 = vadd.f32 %v917_v53, %v916_v58  ;;  %v1293_v53 = vld [vmem:[%s2380_s4 + $0x18] sm:$0xff] (!%p1456_p4) }
 0x24f   : > { %v1772_v58 = vpack.c.bf16 (!%p1456_p4), %v1293_v53, %v1292_v43 }
 0x250   : > { %1880 = vtanh.f32 %v2274_v61 }
 0x25a   : > { %v1881_v63 = vpop.eup %1880 }
 0x25b   : > { %v920_v2 = vmul.f32 %v1881_v63, %v1879_v62  ;;  %v1295_v62 = vld [vmem:[%s2380_s4 + $0x28] sm:$0xff] (!%p1456_p4) }
 0x25d   : > { %997 = vmatmul.mubr.f32.vlgmr.msra.gmra.mrb[4].mxu0 %v920_v2  ;;  %1068 = vmatmul.mubr.f32.vlgmr.msra.gmra.mrb[4].mxu1 %v920_v2  ;;  %v1296_v2 = vld [vmem:[%s2380_s4 + $0x30] sm:$0xff] (!%p1456_p4) }
 0x25e   : > { %1707 = vmatpush1.bf16.msra.mxu0 %v2072_v16  ;;  %1739 = vmatpush1.bf16.msra.mxu1 %v2076_v20 }
 0x25f   : > { %1709 = vmatprep.subr.bf16.mxu0 %v2078_v21  ;;  %1741 = vmatprep.subr.bf16.mxu1 %v2081_v25 }
 0x260   : > { %1177 = vmatprep.mubr.f32.mxu0 %v1958_v11  ;;  %1248 = vmatprep.mubr.f32.mxu1 %v1958_v11 }
 0x262   : > { %1711 = vmatpush1.bf16.msra.mxu0 %v2086_v29  ;;  %1743 = vmatpush1.bf16.msra.mxu1 %v2088_v30 }
 0x263   : > { %1713 = vmatprep.subr.bf16.mxu0 %v2091_v34  ;;  %1745 = vmatprep.subr.bf16.mxu1 %v2094_v38 }
 0x266   : > { %1715 = vmatpush1.bf16.msra.mxu0 %v2097_v42  ;;  %1747 = vmatpush1.bf16.msra.mxu1 %v2101_v46 }
 0x267   : > { %1717 = vmatprep.subr.bf16.mxu0 %v2103_v47  ;;  %1749 = vmatprep.subr.bf16.mxu1 %v2106_v51 }
 0x26a   : > { %1719 = vmatpush1.bf16.msra.mxu0 %v2109_v57  ;;  %1751 = vmatpush1.bf16.msra.mxu1 %v2113_v59 }
 0x26b   : > { %1721 = vmatprep.subr.bf16.mxu0 %v2115_v60  ;;  %1753 = vmatprep.subr.bf16.mxu1 %v2119_v0 }
 0x26e   : > { %1723 = vmatpush1.bf16.msra.mxu0 %v2125_v6  ;;  %1755 = vmatpush1.bf16.msra.mxu1 %v2131_v9 }
 0x26f   : > { %1725 = vmatprep.subr.bf16.mxu0 %v2133_v10  ;;  %1757 = vmatprep.subr.bf16.mxu1 %v2136_v17 }
 0x272   : > { %1727 = vmatpush1.bf16.msra.mxu0 %v2143_v27  ;;  %1759 = vmatpush1.bf16.msra.mxu1 %v2148_v28 }
 0x273   : > { %1729 = vmatprep.subr.bf16.mxu0 %v2150_v31  ;;  %1761 = vmatprep.subr.bf16.mxu1 %v2153_v36 }
 0x276   : > { %1731 = vmatpush1.bf16.msra.mxu0 %v2159_v44  ;;  %1763 = vmatpush1.bf16.msra.mxu1 %v2164_v45 }
 0x277   : > { %1733 = vmatprep.subr.bf16.mxu0 %v2166_v48  ;;  %1765 = vmatprep.subr.bf16.mxu1 %v2169_v52 }
 0x27a   : > { %1735 = vmatpush1.bf16.msra.mxu0 %v2172_v55  ;;  %1767 = vmatpush1.bf16.msra.mxu1 %v2176_v56 }
 0x27b   : > { %1768 = vmatprep.subr.bf16.mxu0 (!%p1456_p4), %v1959_v49 }
 0x330   : > { %v998_v11 = vpop.f32.mrb[4].mxu0  ;;  %v1069_v16 = vpop.f32.mrb[4].mxu1 }
 0x331   : > { %v1796_v20 = vadd.f32 %v998_v11, %v2220_v3  ;;  %v1000_v21 = vpop.f32.mrb[5].mxu0  ;;  %v1071_v25 = vpop.f32.mrb[5].mxu1  ;;  %v1804_v46 = vadd.f32 %v1069_v16, %v2229_v33  ;;  %v1297_v11 = vld [vmem:[%s2380_s4 + $0x38] sm:$0xff] (!%p1456_p4) }
 0x332   : > { %v1797_v29 = vadd.f32 %v1000_v21, %v2222_v4  ;;  %v1805_v38 = vadd.f32 %v1071_v25, %v2226_v24  ;;  %v1778_v16 = vpack.c.bf16 (!%p1456_p4), %v1297_v11, %v1296_v2  ;;  %v1299_v21 = vld [vmem:[%s2380_s4 + $0x48] sm:$0xff] (!%p1456_p4) }
 0x333   : > { %v1450_v30 = vmul.f32 -1.442695, %v1796_v20  ;;  %v1298_v20 = vld [vmem:[%s2380_s4 + $0x40] sm:$0xff] (!%p1456_p4) }
 0x334   : > { %v1451_v34 = vmul.f32 -1.442695, %v1797_v29  ;;  %v1452_v42 = vmul.f32 -1.442695, %v1805_v38  ;;  %v1781_v25 = vpack.c.bf16 (!%p1456_p4), %v1299_v21, %v1298_v20  ;;  %v1300_v29 = vld [vmem:[%s2380_s4 + $0x50] sm:$0xff] (!%p1456_p4)  ;;  %v1302_v38 = vld [vmem:[%s2380_s4 + $0x60] sm:$0xff] (!%p1456_p4) }
 0x335   : > { %1882 = vpow2.f32 %v1450_v30  ;;  %v1301_v30 = vld [vmem:[%s2380_s4 + $0x58] sm:$0xff] (!%p1456_p4) }
 0x336   : > { %1884 = vpow2.f32 %v1451_v34  ;;  %v1784_v34 = vpack.c.bf16 (!%p1456_p4), %v1301_v30, %v1300_v29 }
 0x337   : > { %1886 = vpow2.f32 %v1452_v42  ;;  %v1303_v42 = vld [vmem:[%s2380_s4 + $0x68] sm:$0xff] (!%p1456_p4) }
 0x338   : > { %1888 = vtanh.f32 %v1804_v46  ;;  %v1787_v46 = vpack.c.bf16 (!%p1456_p4), %v1303_v42, %v1302_v38 }
 0x33f   : > { %v1883_v47 = vpop.eup %1882 }
 0x340   : > { %v1885_v51 = vpop.eup %1884  ;;  %v1081_v57 = vadd.f32 1.0, %v1883_v47  ;;  %v1304_v47 = vld [vmem:[%s2380_s4 + $0x70] sm:$0xff] (!%p1456_p4) }
 0x341   : > { %v1087_v59 = vadd.f32 1.0, %v1885_v51  ;;  %v1887_v60 = vpop.eup %1886  ;;  %v1305_v51 = vld [vmem:[%s2380_s4 + $0x78] sm:$0xff] (!%p1456_p4) }
 0x342   : > { %1890 = vrcp.f32 %v1081_v57  ;;  %v1889_v0 = vpop.eup %1888  ;;  %v1094_v17 = vadd.f32 1.0, %v1887_v60  ;;  %v1790_v57 = vpack.c.bf16 (!%p1456_p4), %v1305_v51, %v1304_v47  ;;  %v1457_v60 = vld [vmem:[%s2381_s5] ss:$0 sm:$0xff] (!%p1456_p4) }
 0x343   : > { %1892 = vrcp.f32 %v1087_v59 }
 0x344   : > { %1894 = vrcp.f32 %v1094_v17 }
 0x34c   : > { %v1891_v6 = vpop.eup %1890 }
 0x34d   : > { %v1893_v9 = vpop.eup %1892  ;;  %v1098_v10 = vmul.f32 %v1891_v6, %v1889_v0 }
 0x34e   : > { %v1097_v27 = vmul.f32 %v1893_v9, %v2274_v61  ;;  %v1895_v31 = vpop.eup %1894  ;;  %v1294_v61 = vld [vmem:[%s2380_s4 + $0x20] sm:$0xff] (!%p1456_p4) }
 0x34f   : > { %v1775_v63 = vpack.c.bf16 (!%p1456_p4), %v1295_v62, %v1294_v61 }
 0x350   : > { %v1099_v28 = vadd.f32 %v1098_v10, %v1097_v27 }
 0x352   : > { %1896 = vtanh.f32 %v1099_v28 }
 0x35c   : > { %v1897_v36 = vpop.eup %1896 }
 0x35d   : > { %v1101_v44 = vmul.f32 %v1897_v36, %v1895_v31 }
 0x35f   : > { %1178 = vmatmul.mubr.f32.vlgmr.msra.gmra.mrb[6].mxu0 %v1101_v44  ;;  %1249 = vmatmul.mubr.f32.vlgmr.msra.gmra.mrb[6].mxu1 %v1101_v44 }
 0x360   : > { %1509 = vmatprep.mubr.msk.f32.mxu0 (!%p1456_p4), %vm1960_vm1, %v1961_v54  ;;  %1770 = vmatpush3.bf16.msra.mxu0 (!%p1456_p4), %v1769_v50 }
 0x361   : > { %1771 = vmatprep.subr.bf16.mxu0 (!%p1456_p4), %v1959_v49 }
 0x364   : > { %1773 = vmatpush3.bf16.msra.mxu0 (!%p1456_p4), %v1772_v58 }
 0x365   : > { %1774 = vmatprep.subr.bf16.mxu0 (!%p1456_p4), %v1959_v49 }
 0x368   : > { %1776 = vmatpush3.bf16.msra.mxu0 (!%p1456_p4), %v1775_v63 }
 0x369   : > { %1777 = vmatprep.subr.bf16.mxu0 (!%p1456_p4), %v1959_v49 }
 0x36c   : > { %1779 = vmatpush3.bf16.msra.mxu0 (!%p1456_p4), %v1778_v16 }
 0x36d   : > { %1780 = vmatprep.subr.bf16.mxu0 (!%p1456_p4), %v1959_v49 }
 0x370   : > { %1782 = vmatpush3.bf16.msra.mxu0 (!%p1456_p4), %v1781_v25 }
 0x371   : > { %1783 = vmatprep.subr.bf16.mxu0 (!%p1456_p4), %v1959_v49 }
 0x374   : > { %1785 = vmatpush3.bf16.msra.mxu0 (!%p1456_p4), %v1784_v34 }
 0x375   : > { %1786 = vmatprep.subr.bf16.mxu0 (!%p1456_p4), %v1959_v49 }
 0x378   : > { %1788 = vmatpush3.bf16.msra.mxu0 (!%p1456_p4), %v1787_v46 }
 0x379   : > { %1789 = vmatprep.subr.bf16.mxu0 (!%p1456_p4), %v1959_v49 }
 0x37c   : > { %1791 = vmatpush3.bf16.msra.mxu0 (!%p1456_p4), %v1790_v57 }
 0x432   : > { %v1179_v45 = vpop.f32.mrb[6].mxu0  ;;  %v1250_v48 = vpop.f32.mrb[6].mxu1 }
 0x433   : > { %v1798_v52 = vadd.f32 %v1179_v45, %v2220_v3  ;;  %v1181_v55 = vpop.f32.mrb[7].mxu0  ;;  %v1252_v56 = vpop.f32.mrb[7].mxu1  ;;  %v1806_v15 = vadd.f32 %v1250_v48, %v2229_v33 }
 0x434   : > { %v1799_v1 = vadd.f32 %v1181_v55, %v2222_v4  ;;  %v1807_v13 = vadd.f32 %v1252_v56, %v2226_v24 }
 0x435   : > { %v1453_v5 = vmul.f32 -1.442695, %v1798_v52 }
 0x436   : > { %v1454_v8 = vmul.f32 -1.442695, %v1799_v1  ;;  %v1455_v14 = vmul.f32 -1.442695, %v1807_v13 }
 0x437   : > { %1898 = vpow2.f32 %v1453_v5 }
 0x438   : > { %1900 = vpow2.f32 %v1454_v8 }
 0x439   : > { %1902 = vpow2.f32 %v1455_v14 }
 0x43a   : > { %1904 = vtanh.f32 %v1806_v15 }
 0x441   : > { %v1899_v18 = vpop.eup %1898 }
 0x442   : > { %v1901_v19 = vpop.eup %1900  ;;  %v1262_v22 = vadd.f32 1.0, %v1899_v18 }
 0x443   : > { %v1268_v23 = vadd.f32 1.0, %v1901_v19  ;;  %v1903_v3 = vpop.eup %1902 }
 0x444   : > { %1906 = vrcp.f32 %v1262_v22  ;;  %v1905_v26 = vpop.eup %1904  ;;  %v1275_v37 = vadd.f32 1.0, %v1903_v3 }
 0x445   : > { %1908 = vrcp.f32 %v1268_v23 }
 0x446   : > { %1910 = vrcp.f32 %v1275_v37 }
 0x44e   : > { %v1907_v4 = vpop.eup %1906 }
 0x44f   : > { %v1909_v32 = vpop.eup %1908  ;;  %v1279_v35 = vmul.f32 %v1907_v4, %v1905_v26 }
 0x450   : > { %v1278_v7 = vmul.f32 %v1909_v32, %v1099_v28  ;;  %v1911_v24 = vpop.eup %1910 }
 0x452   : > { %v1280_v39 = vadd.f32 %v1279_v35, %v1278_v7 }
 0x454   : > { %1912 = vtanh.f32 %v1280_v39  ;;  %1284 = vst [vmem:[#allocation4] sm:$0xff] %v1280_v39 }
 0x45b   : > { %1288 = sbr.rel (%p1456_p4) target bundleno = 1344 (0x540), region = 56 }
 0x45e   : > { %v1913_v33 = vpop.eup %1912 }
 0x45f   : > { %v1282_v12 = vmul.f32 %v1913_v33, %v1911_v24 }
 0x461   : > { %1283 = vst [vmem:[#allocation3] sm:$0xff] %v1282_v12 }
 0x468   : > { %v1289_v59 = vld [vmem:[#allocation3] sm:$0xff] }
 0x469   : > { %1510 = vmatmul.mubr.f32.vlgmr.msra.gmra.mrb[0].mxu0 %v1289_v59 }
 0x53c   : > { %v1379_v0 = vpop.f32.mrb[0].mxu0 }
 0x53d   : > { %v1380_v6 = vadd.f32 %v1457_v60, %v1379_v0  ;;  %v1511_v9 = vpop.f32.mrb[1].mxu0 }
 0x53f   : > { %1383 = vst [vmem:[%s2382_s6] sm:$0xff] %v1380_v6 }
 0x540 PF: > { %s17_s21 = sadd.s32 1, %s1952_s21  }
 0x541   : > { %p14_p6 = scmp.ge.s32.totalorder %s17_s21, 4  }
 0x543   :  { %16 = sbr.rel (!%p14_p6) target bundleno = 1 (0x1), region = 87 }
 0x54a   :  { %1395 = vsyncpa [#allocation6], 1 }
 0x54b   :  { %1397 = vsyncpa [#allocation6 + $0x1], 1 }

</bundles_post_ra>
